<compile_context>
chip_gen: v7x
topology: tpu7x:2x2x1
jax: 0.10.0
libtpu: 0.0.40
codegen_flags: <defaults>
</compile_context>

<pallas_src>
import jax
import jax.numpy as jnp
from jax.experimental import pallas as pl
from jax.experimental.pallas import tpu as pltpu


def actor_kernel(x_ref, w1_ref, b1_ref, w2_ref, b2_ref, w3_ref, b3_ref, o_ref):
    # One batch tile per grid step; all three matmuls + activations fused.
    # x / weights are bf16 (MXU operands); bias-add / ReLU / tanh are f32.
    x = x_ref[...]

    # fc1 + ReLU
    h1 = jnp.dot(x, w1_ref[...], preferred_element_type=jnp.float32) + b1_ref[...]
    h1 = jnp.maximum(h1, 0.0)

    # fc2 + ReLU
    h2 = jnp.dot(h1.astype(jnp.bfloat16), w2_ref[...],
                 preferred_element_type=jnp.float32) + b2_ref[...]
    h2 = jnp.maximum(h2, 0.0)

    # fc3 + Tanh (output stored at its true width -- no lane padding in HBM)
    h3 = jnp.dot(h2.astype(jnp.bfloat16), w3_ref[...],
                 preferred_element_type=jnp.float32) + b3_ref[...]
    o_ref[...] = jnp.tanh(h3).astype(o_ref.dtype)


def _round_up(x, m):
    return ((x + m - 1) // m) * m


# Cached choice of grid-dimension semantics (CORE_PARALLEL where supported).
_DIM_SEM = None


def _run_with_best_semantics(call):
    """Try CORE_PARALLEL (v7x: shards batch tiles across both TCs), fall back
    to PARALLEL if this chip / compiler rejects it."""
    global _DIM_SEM
    if _DIM_SEM is not None:
        return call(_DIM_SEM)
    errs = []
    for sem in (pltpu.CORE_PARALLEL, pltpu.PARALLEL):
        try:
            out = jax.block_until_ready(call(sem))
            _DIM_SEM = sem
            return out
        except Exception as e:  # unsupported semantics on this generation
            errs.append(e)
    raise errs[-1]


def actor_forward(state, params, *, tile_max=1024):
    """state: (B, input_dim) float32 -> (B, output_dim) float32."""
    w1, b1, w2, b2, w3, b3 = params
    B, in_dim = state.shape
    h1_dim = w1.shape[1]
    h2_dim = w2.shape[1]
    out_dim = w3.shape[1]

    # bf16 MXU operands; biases stay f32 for the f32 bias-add / activations.
    state_b = state.astype(jnp.bfloat16)
    w1b = w1.astype(jnp.bfloat16)
    w2b = w2.astype(jnp.bfloat16)
    w3b = w3.astype(jnp.bfloat16)

    # Bounded batch padding: round to 8 sublanes, then near-equal 8-aligned
    # tiles (padding <= 8 rows per tile, never almost a whole tile).
    tile_max = max(8, tile_max)
    B8 = _round_up(B, 8)
    num_tiles = pl.cdiv(B8, tile_max)
    tile_b = _round_up(pl.cdiv(B8, num_tiles), 8)
    B_pad = num_tiles * tile_b
    if B_pad != B:
        state_b = jnp.pad(state_b, ((0, B_pad - B), (0, 0)))

    # Advisory cost estimate (kept in sync with bf16 inputs / narrow output).
    flops = 2 * B_pad * (in_dim * h1_dim + h1_dim * h2_dim + h2_dim * out_dim)
    bytes_accessed = (
        2 * B_pad * in_dim                                             # bf16 state
        + 4 * B_pad * out_dim                                          # f32 output
        + 2 * (in_dim * h1_dim + h1_dim * h2_dim + h2_dim * out_dim)   # bf16 weights
        + 4 * (h1_dim + h2_dim + out_dim)                              # f32 biases
    )
    cost = pl.CostEstimate(
        flops=flops, transcendentals=B_pad * out_dim, bytes_accessed=bytes_accessed
    )

    resident = lambda shape: pl.BlockSpec(shape, lambda i: (0, 0))

    def call(dim_sem):
        return pl.pallas_call(
            actor_kernel,
            out_shape=jax.ShapeDtypeStruct((B_pad, out_dim), jnp.float32),
            grid=(num_tiles,),
            in_specs=[
                pl.BlockSpec((tile_b, in_dim), lambda i: (i, 0)),  # state: streamed
                resident(w1b.shape), resident(b1.shape),           # weights: resident
                resident(w2b.shape), resident(b2.shape),
                resident(w3b.shape), resident(b3.shape),
            ],
            out_specs=pl.BlockSpec((tile_b, out_dim), lambda i: (i, 0)),
            compiler_params=pltpu.CompilerParams(
                dimension_semantics=(dim_sem,),
            ),
            cost_estimate=cost,
        )(state_b, w1b, b1, w2b, b2, w3b, b3)

    out_padded = _run_with_best_semantics(call)

    # Strip batch padding only (output already at its true width).
    return out_padded[:B]


def init_actor_params(key, input_dim, output_dim):
    """Deterministic init mimicking nn.Linear default (uniform +/- 1/sqrt(fan_in))."""
    dims = [(input_dim, 128), (128, 64), (64, output_dim)]
    params = []
    for (fan_in, fan_out) in dims:
        key, kw, kb = jax.random.split(key, 3)
        bound = 1.0 / jnp.sqrt(fan_in)
        w = jax.random.uniform(kw, (fan_in, fan_out), jnp.float32, -bound, bound)
        b = jax.random.uniform(kb, (1, fan_out), jnp.float32, -bound, bound)
        params.extend([w, b])
    return tuple(params)


def actor_reference(state, params):
    w1, b1, w2, b2, w3, b3 = params
    x = jnp.maximum(state @ w1 + b1, 0.0)
    x = jnp.maximum(x @ w2 + b2, 0.0)
    return jnp.tanh(x @ w3 + b3)


if __name__ == "__main__":
    key = jax.random.PRNGKey(0)
    input_dim, output_dim = 16, 4

    k_state, k_params, k_state2 = jax.random.split(key, 3)
    params = init_actor_params(k_params, input_dim, output_dim)

    # Small MADDPG-like shape (batch=4): pads batch to 8, single grid step.
    state = jax.random.normal(k_state, (4, input_dim), jnp.float32)
    out = jax.block_until_ready(actor_forward(state, params))
    ref = actor_reference(state, params)
    assert out.shape == (4, output_dim)
    # bf16 MXU operands -> loosened tolerance vs f32 reference.
    assert jnp.allclose(out, ref, atol=3e-2, rtol=3e-2), "mismatch vs reference (B=4)"

    # Multi-tile path: batch not a multiple of the tile, several grid steps.
    state2 = jax.random.normal(k_state2, (300, input_dim), jnp.float32)
    out2 = jax.block_until_ready(actor_forward(state2, params, tile_max=128))
    ref2 = actor_reference(state2, params)
    assert out2.shape == (300, output_dim)
    assert jnp.allclose(out2, ref2, atol=3e-2, rtol=3e-2), "mismatch vs reference (B=300)"

    print("KERNEL_OK")
</pallas_src>

<mosaic_0001>
module attributes {stable_mosaic.version = 11 : i64} {
  func.func @actor_kernel(%arg0: i32, %arg1: memref<8x16xbf16, #tpu.memory_space<vmem>>, %arg2: memref<16x128xbf16, #tpu.memory_space<vmem>>, %arg3: memref<1x128xf32, #tpu.memory_space<vmem>>, %arg4: memref<128x64xbf16, #tpu.memory_space<vmem>>, %arg5: memref<1x64xf32, #tpu.memory_space<vmem>>, %arg6: memref<64x4xbf16, #tpu.memory_space<vmem>>, %arg7: memref<1x4xf32, #tpu.memory_space<vmem>>, %arg8: memref<8x4xf32, #tpu.memory_space<vmem>>) attributes {dimension_semantics = [#tpu.dimension_semantics<core_parallel>], iteration_bounds = array<i64: 1>, scalar_prefetch = 0 : i64, scratch_operands = 0 : i64, tpu.core_type = #tpu.core_type<tc>, window_params = [{transform_indices = @transform_0, window_bounds = array<i64: 8, 16>}, {pipeline_mode = #tpu.pipeline_mode<synchronous>, transform_indices = @transform_1, window_bounds = array<i64: 16, 128>}, {pipeline_mode = #tpu.pipeline_mode<synchronous>, transform_indices = @transform_2, window_bounds = array<i64: 1, 128>}, {pipeline_mode = #tpu.pipeline_mode<synchronous>, transform_indices = @transform_3, window_bounds = array<i64: 128, 64>}, {pipeline_mode = #tpu.pipeline_mode<synchronous>, transform_indices = @transform_4, window_bounds = array<i64: 1, 64>}, {pipeline_mode = #tpu.pipeline_mode<synchronous>, transform_indices = @transform_5, window_bounds = array<i64: 64, 4>}, {pipeline_mode = #tpu.pipeline_mode<synchronous>, transform_indices = @transform_6, window_bounds = array<i64: 1, 4>}, {transform_indices = @transform_7, window_bounds = array<i64: 8, 4>}]} {
    %c0 = arith.constant 0 : index
    %c0_0 = arith.constant 0 : index
    %0 = vector.load %arg1[%c0, %c0_0] : memref<8x16xbf16, #tpu.memory_space<vmem>>, vector<8x16xbf16>
    %c0_1 = arith.constant 0 : index
    %c0_2 = arith.constant 0 : index
    %1 = vector.load %arg2[%c0_1, %c0_2] : memref<16x128xbf16, #tpu.memory_space<vmem>>, vector<16x128xbf16>
    %cst = arith.constant dense<0.000000e+00> : vector<8x128xf32>
    %2 = tpu.matmul %0, %1, %cst {dimension_numbers = #tpu.dot_dimension_numbers<[1], [0], [0], [1], [0, 0, 1, 1], [], []>} : vector<8x16xbf16>, vector<16x128xbf16>, vector<8x128xf32> -> vector<8x128xf32>
    %c0_3 = arith.constant 0 : index
    %c0_4 = arith.constant 0 : index
    %3 = vector.load %arg3[%c0_3, %c0_4] : memref<1x128xf32, #tpu.memory_space<vmem>>, vector<1x128xf32>
    %4 = vector.broadcast %3 : vector<1x128xf32> to vector<8x128xf32>
    %5 = arith.addf %2, %4 : vector<8x128xf32>
    %cst_5 = arith.constant 0.000000e+00 : f32
    %6 = vector.broadcast %cst_5 : f32 to vector<8x128xf32>
    %7 = arith.maximumf %5, %6 : vector<8x128xf32>
    %8 = arith.truncf %7 : vector<8x128xf32> to vector<8x128xbf16>
    %c0_6 = arith.constant 0 : index
    %c0_7 = arith.constant 0 : index
    %9 = vector.load %arg4[%c0_6, %c0_7] : memref<128x64xbf16, #tpu.memory_space<vmem>>, vector<128x64xbf16>
    %cst_8 = arith.constant dense<0.000000e+00> : vector<8x64xf32>
    %10 = tpu.matmul %8, %9, %cst_8 {dimension_numbers = #tpu.dot_dimension_numbers<[1], [0], [0], [1], [0, 0, 1, 1], [], []>} : vector<8x128xbf16>, vector<128x64xbf16>, vector<8x64xf32> -> vector<8x64xf32>
    %c0_9 = arith.constant 0 : index
    %c0_10 = arith.constant 0 : index
    %11 = vector.load %arg5[%c0_9, %c0_10] : memref<1x64xf32, #tpu.memory_space<vmem>>, vector<1x64xf32>
    %12 = vector.broadcast %11 : vector<1x64xf32> to vector<8x64xf32>
    %13 = arith.addf %10, %12 : vector<8x64xf32>
    %cst_11 = arith.constant 0.000000e+00 : f32
    %14 = vector.broadcast %cst_11 : f32 to vector<8x64xf32>
    %15 = arith.maximumf %13, %14 : vector<8x64xf32>
    %16 = arith.truncf %15 : vector<8x64xf32> to vector<8x64xbf16>
    %c0_12 = arith.constant 0 : index
    %c0_13 = arith.constant 0 : index
    %17 = vector.load %arg6[%c0_12, %c0_13] : memref<64x4xbf16, #tpu.memory_space<vmem>>, vector<64x4xbf16>
    %cst_14 = arith.constant dense<0.000000e+00> : vector<8x4xf32>
    %18 = tpu.matmul %16, %17, %cst_14 {dimension_numbers = #tpu.dot_dimension_numbers<[1], [0], [0], [1], [0, 0, 1, 1], [], []>} : vector<8x64xbf16>, vector<64x4xbf16>, vector<8x4xf32> -> vector<8x4xf32>
    %c0_15 = arith.constant 0 : index
    %c0_16 = arith.constant 0 : index
    %19 = vector.load %arg7[%c0_15, %c0_16] : memref<1x4xf32, #tpu.memory_space<vmem>>, vector<1x4xf32>
    %20 = vector.broadcast %19 : vector<1x4xf32> to vector<8x4xf32>
    %21 = arith.addf %18, %20 : vector<8x4xf32>
    %22 = math.tanh %21 : vector<8x4xf32>
    %c0_17 = arith.constant 0 : index
    %c0_18 = arith.constant 0 : index
    %23 = vector.load %arg8[%c0_17, %c0_18] : memref<8x4xf32, #tpu.memory_space<vmem>>, vector<8x4xf32>
    tpu.vector_store %arg8[%c0_17, %c0_18], %22 {strides = array<i32>} : memref<8x4xf32, #tpu.memory_space<vmem>>, vector<8x4xf32>,
    return
  }
  func.func @transform_0(%arg0: i32) -> (i32, i32) {
    %c0_i32 = arith.constant 0 : i32
    %c0_i32_0 = arith.constant 0 : i32
    return %arg0, %c0_i32 : i32, i32
  }
  func.func @transform_1(%arg0: i32) -> (i32, i32) {
    %c0_i32 = arith.constant 0 : i32
    %c0_i32_0 = arith.constant 0 : i32
    %c0_i32_1 = arith.constant 0 : i32
    return %c0_i32, %c0_i32_0 : i32, i32
  }
  func.func @transform_2(%arg0: i32) -> (i32, i32) {
    %c0_i32 = arith.constant 0 : i32
    %c0_i32_0 = arith.constant 0 : i32
    %c0_i32_1 = arith.constant 0 : i32
    return %c0_i32, %c0_i32_0 : i32, i32
  }
  func.func @transform_3(%arg0: i32) -> (i32, i32) {
    %c0_i32 = arith.constant 0 : i32
    %c0_i32_0 = arith.constant 0 : i32
    %c0_i32_1 = arith.constant 0 : i32
    return %c0_i32, %c0_i32_0 : i32, i32
  }
  func.func @transform_4(%arg0: i32) -> (i32, i32) {
    %c0_i32 = arith.constant 0 : i32
    %c0_i32_0 = arith.constant 0 : i32
    %c0_i32_1 = arith.constant 0 : i32
    return %c0_i32, %c0_i32_0 : i32, i32
  }
  func.func @transform_5(%arg0: i32) -> (i32, i32) {
    %c0_i32 = arith.constant 0 : i32
    %c0_i32_0 = arith.constant 0 : i32
    %c0_i32_1 = arith.constant 0 : i32
    return %c0_i32, %c0_i32_0 : i32, i32
  }
  func.func @transform_6(%arg0: i32) -> (i32, i32) {
    %c0_i32 = arith.constant 0 : i32
    %c0_i32_0 = arith.constant 0 : i32
    %c0_i32_1 = arith.constant 0 : i32
    return %c0_i32, %c0_i32_0 : i32, i32
  }
  func.func @transform_7(%arg0: i32) -> (i32, i32) {
    %c0_i32 = arith.constant 0 : i32
    %c0_i32_0 = arith.constant 0 : i32
    return %arg0, %c0_i32 : i32, i32
  }
}

module attributes {stable_mosaic.version = 11 : i64} {
  func.func @actor_kernel(%arg0: i32, %arg1: memref<8x16xbf16, #tpu.memory_space<vmem>>, %arg2: memref<16x128xbf16, #tpu.memory_space<vmem>>, %arg3: memref<1x128xf32, #tpu.memory_space<vmem>>, %arg4: memref<128x64xbf16, #tpu.memory_space<vmem>>, %arg5: memref<1x64xf32, #tpu.memory_space<vmem>>, %arg6: memref<64x4xbf16, #tpu.memory_space<vmem>>, %arg7: memref<1x4xf32, #tpu.memory_space<vmem>>, %arg8: memref<8x4xf32, #tpu.memory_space<vmem>>) attributes {dimension_semantics = [#tpu.dimension_semantics<parallel>], iteration_bounds = array<i64: 1>, scalar_prefetch = 0 : i64, scratch_operands = 0 : i64, tpu.core_type = #tpu.core_type<tc>, window_params = [{transform_indices = @transform_0, window_bounds = array<i64: 8, 16>}, {pipeline_mode = #tpu.pipeline_mode<synchronous>, transform_indices = @transform_1, window_bounds = array<i64: 16, 128>}, {pipeline_mode = #tpu.pipeline_mode<synchronous>, transform_indices = @transform_2, window_bounds = array<i64: 1, 128>}, {pipeline_mode = #tpu.pipeline_mode<synchronous>, transform_indices = @transform_3, window_bounds = array<i64: 128, 64>}, {pipeline_mode = #tpu.pipeline_mode<synchronous>, transform_indices = @transform_4, window_bounds = array<i64: 1, 64>}, {pipeline_mode = #tpu.pipeline_mode<synchronous>, transform_indices = @transform_5, window_bounds = array<i64: 64, 4>}, {pipeline_mode = #tpu.pipeline_mode<synchronous>, transform_indices = @transform_6, window_bounds = array<i64: 1, 4>}, {transform_indices = @transform_7, window_bounds = array<i64: 8, 4>}]} {
    %c0 = arith.constant 0 : index
    %c0_0 = arith.constant 0 : index
    %0 = vector.load %arg1[%c0, %c0_0] : memref<8x16xbf16, #tpu.memory_space<vmem>>, vector<8x16xbf16>
    %c0_1 = arith.constant 0 : index
    %c0_2 = arith.constant 0 : index
    %1 = vector.load %arg2[%c0_1, %c0_2] : memref<16x128xbf16, #tpu.memory_space<vmem>>, vector<16x128xbf16>
    %cst = arith.constant dense<0.000000e+00> : vector<8x128xf32>
    %2 = tpu.matmul %0, %1, %cst {dimension_numbers = #tpu.dot_dimension_numbers<[1], [0], [0], [1], [0, 0, 1, 1], [], []>} : vector<8x16xbf16>, vector<16x128xbf16>, vector<8x128xf32> -> vector<8x128xf32>
    %c0_3 = arith.constant 0 : index
    %c0_4 = arith.constant 0 : index
    %3 = vector.load %arg3[%c0_3, %c0_4] : memref<1x128xf32, #tpu.memory_space<vmem>>, vector<1x128xf32>
    %4 = vector.broadcast %3 : vector<1x128xf32> to vector<8x128xf32>
    %5 = arith.addf %2, %4 : vector<8x128xf32>
    %cst_5 = arith.constant 0.000000e+00 : f32
    %6 = vector.broadcast %cst_5 : f32 to vector<8x128xf32>
    %7 = arith.maximumf %5, %6 : vector<8x128xf32>
    %8 = arith.truncf %7 : vector<8x128xf32> to vector<8x128xbf16>
    %c0_6 = arith.constant 0 : index
    %c0_7 = arith.constant 0 : index
    %9 = vector.load %arg4[%c0_6, %c0_7] : memref<128x64xbf16, #tpu.memory_space<vmem>>, vector<128x64xbf16>
    %cst_8 = arith.constant dense<0.000000e+00> : vector<8x64xf32>
    %10 = tpu.matmul %8, %9, %cst_8 {dimension_numbers = #tpu.dot_dimension_numbers<[1], [0], [0], [1], [0, 0, 1, 1], [], []>} : vector<8x128xbf16>, vector<128x64xbf16>, vector<8x64xf32> -> vector<8x64xf32>
    %c0_9 = arith.constant 0 : index
    %c0_10 = arith.constant 0 : index
    %11 = vector.load %arg5[%c0_9, %c0_10] : memref<1x64xf32, #tpu.memory_space<vmem>>, vector<1x64xf32>
    %12 = vector.broadcast %11 : vector<1x64xf32> to vector<8x64xf32>
    %13 = arith.addf %10, %12 : vector<8x64xf32>
    %cst_11 = arith.constant 0.000000e+00 : f32
    %14 = vector.broadcast %cst_11 : f32 to vector<8x64xf32>
    %15 = arith.maximumf %13, %14 : vector<8x64xf32>
    %16 = arith.truncf %15 : vector<8x64xf32> to vector<8x64xbf16>
    %c0_12 = arith.constant 0 : index
    %c0_13 = arith.constant 0 : index
    %17 = vector.load %arg6[%c0_12, %c0_13] : memref<64x4xbf16, #tpu.memory_space<vmem>>, vector<64x4xbf16>
    %cst_14 = arith.constant dense<0.000000e+00> : vector<8x4xf32>
    %18 = tpu.matmul %16, %17, %cst_14 {dimension_numbers = #tpu.dot_dimension_numbers<[1], [0], [0], [1], [0, 0, 1, 1], [], []>} : vector<8x64xbf16>, vector<64x4xbf16>, vector<8x4xf32> -> vector<8x4xf32>
    %c0_15 = arith.constant 0 : index
    %c0_16 = arith.constant 0 : index
    %19 = vector.load %arg7[%c0_15, %c0_16] : memref<1x4xf32, #tpu.memory_space<vmem>>, vector<1x4xf32>
    %20 = vector.broadcast %19 : vector<1x4xf32> to vector<8x4xf32>
    %21 = arith.addf %18, %20 : vector<8x4xf32>
    %22 = math.tanh %21 : vector<8x4xf32>
    %c0_17 = arith.constant 0 : index
    %c0_18 = arith.constant 0 : index
    %23 = vector.load %arg8[%c0_17, %c0_18] : memref<8x4xf32, #tpu.memory_space<vmem>>, vector<8x4xf32>
    tpu.vector_store %arg8[%c0_17, %c0_18], %22 {strides = array<i32>} : memref<8x4xf32, #tpu.memory_space<vmem>>, vector<8x4xf32>,
    return
  }
  func.func @transform_0(%arg0: i32) -> (i32, i32) {
    %c0_i32 = arith.constant 0 : i32
    %c0_i32_0 = arith.constant 0 : i32
    return %arg0, %c0_i32 : i32, i32
  }
  func.func @transform_1(%arg0: i32) -> (i32, i32) {
    %c0_i32 = arith.constant 0 : i32
    %c0_i32_0 = arith.constant 0 : i32
    %c0_i32_1 = arith.constant 0 : i32
    return %c0_i32, %c0_i32_0 : i32, i32
  }
  func.func @transform_2(%arg0: i32) -> (i32, i32) {
    %c0_i32 = arith.constant 0 : i32
    %c0_i32_0 = arith.constant 0 : i32
    %c0_i32_1 = arith.constant 0 : i32
    return %c0_i32, %c0_i32_0 : i32, i32
  }
  func.func @transform_3(%arg0: i32) -> (i32, i32) {
    %c0_i32 = arith.constant 0 : i32
    %c0_i32_0 = arith.constant 0 : i32
    %c0_i32_1 = arith.constant 0 : i32
    return %c0_i32, %c0_i32_0 : i32, i32
  }
  func.func @transform_4(%arg0: i32) -> (i32, i32) {
    %c0_i32 = arith.constant 0 : i32
    %c0_i32_0 = arith.constant 0 : i32
    %c0_i32_1 = arith.constant 0 : i32
    return %c0_i32, %c0_i32_0 : i32, i32
  }
  func.func @transform_5(%arg0: i32) -> (i32, i32) {
    %c0_i32 = arith.constant 0 : i32
    %c0_i32_0 = arith.constant 0 : i32
    %c0_i32_1 = arith.constant 0 : i32
    return %c0_i32, %c0_i32_0 : i32, i32
  }
  func.func @transform_6(%arg0: i32) -> (i32, i32) {
    %c0_i32 = arith.constant 0 : i32
    %c0_i32_0 = arith.constant 0 : i32
    %c0_i32_1 = arith.constant 0 : i32
    return %c0_i32, %c0_i32_0 : i32, i32
  }
  func.func @transform_7(%arg0: i32) -> (i32, i32) {
    %c0_i32 = arith.constant 0 : i32
    %c0_i32_0 = arith.constant 0 : i32
    return %arg0, %c0_i32 : i32, i32
  }
}

</mosaic_0001>

<bundles_post_ra>
// kernel: tpu_custom_call.1
= control target key start
LH: loop header
LB: loop body
LE: loop exit
PB: predicated region body
PF: predicated region fallthrough
CT: control target
= control target key end

     0   :  { %v425_v0 = vmov 0.0   ;;  %vm426_vm0 = vmmov 0   ;;  %vm63_vm1 = vcmask 130048   ;;  %vm261_vm2 = vcmask 523264   ;;  %s524_s1 = inlined_call_operand.vmem [shape: bf16[16,128], index: 1, kind: input, shape index: {}]   ;;  %s525_s3 = inlined_call_operand.vmem [shape: bf16[128,64], index: 3, kind: input, shape index: {}]   ;;  %s526_s0 = inlined_call_operand.vmem [shape: bf16[8,16], index: 0, kind: input, shape index: {}]   ;;  %s527_s5 = inlined_call_operand.vmem [shape: bf16[64,4], index: 5, kind: input, shape index: {}]   ;;  %s528_s2 = inlined_call_operand.vmem [shape: f32[1,128], index: 2, kind: input, shape index: {}]   ;;  %s529_s4 = inlined_call_operand.vmem [shape: f32[1,64], index: 4, kind: input, shape index: {}]   ;;  %s530_s6 = inlined_call_operand.vmem [shape: f32[1,4], index: 6, kind: input, shape index: {}]   ;;  %s531_s7 = inlined_call_operand.vmem [shape: f32[8,4], index: 7, kind: output, shape index: {}]  }
   0x1   :  { %370 = vmatprep.subr.bf16.mxu0 %v425_v0  ;;  %v410_v1 = vld [vmem:[%s524_s1] sm:$0xff]   ;;  %372 = vmatprep.mubr.msk.bf16.mxu0 %vm426_vm0, %v425_v0  ;;  %v412_v3 = vld [vmem:[%s525_s3 + $0x8] sm:$0xff]   ;;  %v413_v4 = vld [vmem:[%s525_s3 + $0x10] sm:$0xff]   ;;  %vm306_vm3 = vcmask 31744  }
   0x2   :  { %376 = vmatprep.subr.bf16.mxu1 %v425_v0  ;;  %v411_v2 = vld [vmem:[%s525_s3] sm:$0xff]   ;;  %392 = vmatprep.mubr.msk.bf16.mxu1 %vm426_vm0, %v425_v0  ;;  %v414_v6 = vld [vmem:[%s525_s3 + $0x18] sm:$0xff]   ;;  %v416_v8 = vld [vmem:[%s525_s3 + $0x28] sm:$0xff]  }
   0x3   :  { %371 = vmatpush3.bf16.msra.mxu0 %v410_v1  ;;  %377 = vmatpush3.bf16.msra.mxu1 %v411_v2  ;;  %v47_v5 = vld [vmem:[%s526_s0] sm:$0xf]  ;;  %v417_v9 = vld [vmem:[%s525_s3 + $0x30] sm:$0xff]   ;;  %v418_v10 = vld [vmem:[%s525_s3 + $0x38] sm:$0xff]  }
   0x4   :  { %396 = vmatprep.subr.bf16.mxu0 %v425_v0  ;;  %378 = vmatprep.subr.bf16.mxu1 %v425_v0  ;;  %v415_v7 = vld [vmem:[%s525_s3 + $0x20] sm:$0xff]   ;;  %v420_v12 = vld [vmem:[%s527_s5 + $0x8] sm:$0xff]   ;;  %v421_v21 = vld [vmem:[%s527_s5 + $0x10] sm:$0xff]  }
   0x5   :  { %v419_v11 = vld [vmem:[%s527_s5] sm:$0xff]   ;;  %v422_v22 = vld [vmem:[%s527_s5 + $0x18] sm:$0xff]  }
   0x6   :  { %373 = vmatmul.mubr.msk.bf16.vlgmr.msra.gmra.mrb[0].mxu0 %vm63_vm1, %v47_v5  ;;  %v336_v13 = vld [vmem:[%s528_s2] ss:$0 sm:$0xff] }
   0x7   :  { %379 = vmatpush3.bf16.msra.mxu1 %v412_v3  ;;  %404 = vmatprep.mubr.msk.bf16.mxu0 %vm426_vm0, %v425_v0  ;;  %v339_v23 = vld [vmem:[%s529_s4] ss:$0 sm:$0xff] }
   0x8   :  { %380 = vmatprep.subr.bf16.mxu1 %v425_v0  ;;  %397 = vmatpush3.bf16.msra.mxu0 %v419_v11  ;;  %v348_v31 = vld [vmem:[%s530_s6] ss:$0 sm:$0xff] }
   0x9   :  { %398 = vmatprep.subr.bf16.mxu0 %v425_v0 }
   0xb   :  { %381 = vmatpush3.bf16.msra.mxu1 %v413_v4 }
   0xc   :  { %382 = vmatprep.subr.bf16.mxu1 %v425_v0  ;;  %399 = vmatpush3.bf16.msra.mxu0 %v420_v12 }
   0xd   :  { %400 = vmatprep.subr.bf16.mxu0 %v425_v0 }
   0xf   :  { %383 = vmatpush3.bf16.msra.mxu1 %v414_v6 }
  0x10   :  { %384 = vmatprep.subr.bf16.mxu1 %v425_v0  ;;  %401 = vmatpush3.bf16.msra.mxu0 %v421_v21 }
  0x11   :  { %402 = vmatprep.subr.bf16.mxu0 %v425_v0 }
  0x13   :  { %385 = vmatpush3.bf16.msra.mxu1 %v415_v7 }
  0x14   :  { %386 = vmatprep.subr.bf16.mxu1 %v425_v0  ;;  %403 = vmatpush3.bf16.msra.mxu0 %v422_v22 }
  0x17   :  { %387 = vmatpush3.bf16.msra.mxu1 %v416_v8 }
  0x18   :  { %388 = vmatprep.subr.bf16.mxu1 %v425_v0 }
  0x1b   :  { %389 = vmatpush3.bf16.msra.mxu1 %v417_v9 }
  0x1c   :  { %390 = vmatprep.subr.bf16.mxu1 %v425_v0 }
  0x1f   :  { %391 = vmatpush3.bf16.msra.mxu1 %v418_v10 }
  0xd9   :  { %v101_v14 = vpop.f32.mrb[0].mxu0 }
  0xda   :  { %v102_v15 = vadd.f32 %v336_v13, %v101_v14  ;;  %v374_v16 = vpop.f32.mrb[1].mxu0 }
  0xdb   :  { %v104_v17 = vpop.f32.mrb[2].mxu0 }
  0xdc   :  { %v107_v18 = vmax.f32 %v102_v15, 0.0  ;;  %v375_v19 = vpop.f32.mrb[3].mxu0 }
  0xde   :  { %v108_v20 = vpack.c.bf16 %v107_v18, %v107_v18 }
  0xe0   :  { %393 = vmatmul.mubr.bf16.vlgmr.msra.gmra.mrb[0].mxu1 %v108_v20 }
 0x1b3   :  { %v214_v24 = vpop.f32.mrb[0].mxu1 }
 0x1b4   :  { %v215_v25 = vadd.f32 %v339_v23, %v214_v24  ;;  %v394_v26 = vpop.f32.mrb[1].mxu1 }
 0x1b5   :  { %v217_v27 = vpop.f32.mrb[2].mxu1 }
 0x1b6   :  { %v220_v28 = vmax.f32 %v215_v25, 0.0  ;;  %v395_v29 = vpop.f32.mrb[3].mxu1 }
 0x1b8   :  { %v221_v30 = vpack.c.bf16 %v220_v28, %v220_v28 }
 0x1ba   :  { %405 = vmatmul.mubr.msk.bf16.vlgmr.msra.gmra.mrb[4].mxu0 %vm261_vm2, %v221_v30 }
 0x28d   :  { %v299_v32 = vpop.f32.mrb[4].mxu0 }
 0x28e   :  { %v300_v33 = vadd.f32 %v348_v31, %v299_v32  ;;  %v406_v34 = vpop.f32.mrb[5].mxu0 }
 0x28f   :  { %v302_v35 = vpop.f32.mrb[6].mxu0 }
 0x290   :  { %423 = vtanh.f32 %v300_v33  ;;  %v407_v36 = vpop.f32.mrb[7].mxu0 }
 0x29a   :  { %v424_v37 = vpop.eup %423 }
 0x29b   :  { %307 = vst.msk [vmem:[%s531_s7] sm:$0xff] %vm306_vm3, %v424_v37 }

// kernel: tpu_custom_call.1
= control target key start
LH: loop header
LB: loop body
LE: loop exit
PB: predicated region body
PF: predicated region fallthrough
CT: control target
= control target key end

     0   :  { %v381_v0 = vmov 0.0   ;;  %vm382_vm0 = vmmov 0   ;;  %vm43_vm1 = vcmask 130048   ;;  %vm241_vm2 = vcmask 523264   ;;  %s477_s1 = inlined_call_operand.vmem [shape: bf16[16,128], index: 1, kind: input, shape index: {}]   ;;  %s478_s0 = inlined_call_operand.vmem [shape: bf16[8,16], index: 0, kind: input, shape index: {}]   ;;  %s479_s3 = inlined_call_operand.vmem [shape: bf16[128,64], index: 3, kind: input, shape index: {}]   ;;  %s480_s5 = inlined_call_operand.vmem [shape: bf16[64,4], index: 5, kind: input, shape index: {}]   ;;  %s481_s2 = inlined_call_operand.vmem [shape: f32[1,128], index: 2, kind: input, shape index: {}]   ;;  %s482_s4 = inlined_call_operand.vmem [shape: f32[1,64], index: 4, kind: input, shape index: {}]   ;;  %s483_s6 = inlined_call_operand.vmem [shape: f32[1,4], index: 6, kind: input, shape index: {}]   ;;  %s484_s7 = inlined_call_operand.vmem [shape: f32[8,4], index: 7, kind: output, shape index: {}]  }
   0x1   :  { %326 = vmatprep.subr.bf16.mxu0 %v381_v0  ;;  %v366_v1 = vld [vmem:[%s477_s1] sm:$0xff]   ;;  %328 = vmatprep.mubr.msk.bf16.mxu0 %vm382_vm0, %v381_v0  ;;  %v368_v4 = vld [vmem:[%s479_s3 + $0x8] sm:$0xff]   ;;  %v369_v5 = vld [vmem:[%s479_s3 + $0x10] sm:$0xff]   ;;  %vm286_vm3 = vcmask 31744  }
   0x2   :  { %v27_v2 = vld [vmem:[%s478_s0] sm:$0xf]  ;;  %332 = vmatprep.subr.bf16.mxu1 %v381_v0  ;;  %348 = vmatprep.mubr.msk.bf16.mxu1 %vm382_vm0, %v381_v0  ;;  %v370_v6 = vld [vmem:[%s479_s3 + $0x18] sm:$0xff]   ;;  %v372_v8 = vld [vmem:[%s479_s3 + $0x28] sm:$0xff]  }
   0x3   :  { %327 = vmatpush3.bf16.msra.mxu0 %v366_v1  ;;  %v367_v3 = vld [vmem:[%s479_s3] sm:$0xff]   ;;  %v373_v9 = vld [vmem:[%s479_s3 + $0x30] sm:$0xff]   ;;  %v374_v10 = vld [vmem:[%s479_s3 + $0x38] sm:$0xff]  }
   0x4   :  { %352 = vmatprep.subr.bf16.mxu0 %v381_v0  ;;  %333 = vmatpush3.bf16.msra.mxu1 %v367_v3  ;;  %v371_v7 = vld [vmem:[%s479_s3 + $0x20] sm:$0xff]   ;;  %v376_v12 = vld [vmem:[%s480_s5 + $0x8] sm:$0xff]   ;;  %v377_v21 = vld [vmem:[%s480_s5 + $0x10] sm:$0xff]  }
   0x5   :  { %334 = vmatprep.subr.bf16.mxu1 %v381_v0  ;;  %v375_v11 = vld [vmem:[%s480_s5] sm:$0xff]   ;;  %v378_v22 = vld [vmem:[%s480_s5 + $0x18] sm:$0xff]  }
   0x6   :  { %329 = vmatmul.mubr.msk.bf16.vlgmr.msra.gmra.mrb[0].mxu0 %vm43_vm1, %v27_v2  ;;  %v292_v13 = vld [vmem:[%s481_s2] ss:$0 sm:$0xff] }
   0x7   :  { %360 = vmatprep.mubr.msk.bf16.mxu0 %vm382_vm0, %v381_v0  ;;  %353 = vmatpush3.bf16.msra.mxu0 %v375_v11  ;;  %v295_v23 = vld [vmem:[%s482_s4] ss:$0 sm:$0xff] }
   0x8   :  { %335 = vmatpush3.bf16.msra.mxu1 %v368_v4  ;;  %354 = vmatprep.subr.bf16.mxu0 %v381_v0  ;;  %v304_v31 = vld [vmem:[%s483_s6] ss:$0 sm:$0xff] }
   0x9   :  { %336 = vmatprep.subr.bf16.mxu1 %v381_v0 }
   0xb   :  { %355 = vmatpush3.bf16.msra.mxu0 %v376_v12 }
   0xc   :  { %337 = vmatpush3.bf16.msra.mxu1 %v369_v5  ;;  %356 = vmatprep.subr.bf16.mxu0 %v381_v0 }
   0xd   :  { %338 = vmatprep.subr.bf16.mxu1 %v381_v0 }
   0xf   :  { %357 = vmatpush3.bf16.msra.mxu0 %v377_v21 }
  0x10   :  { %339 = vmatpush3.bf16.msra.mxu1 %v370_v6  ;;  %358 = vmatprep.subr.bf16.mxu0 %v381_v0 }
  0x11   :  { %340 = vmatprep.subr.bf16.mxu1 %v381_v0 }
  0x13   :  { %359 = vmatpush3.bf16.msra.mxu0 %v378_v22 }
  0x14   :  { %341 = vmatpush3.bf16.msra.mxu1 %v371_v7 }
  0x15   :  { %342 = vmatprep.subr.bf16.mxu1 %v381_v0 }
  0x18   :  { %343 = vmatpush3.bf16.msra.mxu1 %v372_v8 }
  0x19   :  { %344 = vmatprep.subr.bf16.mxu1 %v381_v0 }
  0x1c   :  { %345 = vmatpush3.bf16.msra.mxu1 %v373_v9 }
  0x1d   :  { %346 = vmatprep.subr.bf16.mxu1 %v381_v0 }
  0x20   :  { %347 = vmatpush3.bf16.msra.mxu1 %v374_v10 }
  0xd9   :  { %v81_v14 = vpop.f32.mrb[0].mxu0 }
  0xda   :  { %v82_v15 = vadd.f32 %v292_v13, %v81_v14  ;;  %v330_v16 = vpop.f32.mrb[1].mxu0 }
  0xdb   :  { %v84_v17 = vpop.f32.mrb[2].mxu0 }
  0xdc   :  { %v87_v18 = vmax.f32 %v82_v15, 0.0  ;;  %v331_v19 = vpop.f32.mrb[3].mxu0 }
  0xde   :  { %v88_v20 = vpack.c.bf16 %v87_v18, %v87_v18 }
  0xe0   :  { %349 = vmatmul.mubr.bf16.vlgmr.msra.gmra.mrb[0].mxu1 %v88_v20 }
 0x1b3   :  { %v194_v24 = vpop.f32.mrb[0].mxu1 }
 0x1b4   :  { %v195_v25 = vadd.f32 %v295_v23, %v194_v24  ;;  %v350_v26 = vpop.f32.mrb[1].mxu1 }
 0x1b5   :  { %v197_v27 = vpop.f32.mrb[2].mxu1 }
 0x1b6   :  { %v200_v28 = vmax.f32 %v195_v25, 0.0  ;;  %v351_v29 = vpop.f32.mrb[3].mxu1 }
 0x1b8   :  { %v201_v30 = vpack.c.bf16 %v200_v28, %v200_v28 }
 0x1ba   :  { %361 = vmatmul.mubr.msk.bf16.vlgmr.msra.gmra.mrb[4].mxu0 %vm241_vm2, %v201_v30 }
 0x28d   :  { %v279_v32 = vpop.f32.mrb[4].mxu0 }
 0x28e   :  { %v280_v33 = vadd.f32 %v304_v31, %v279_v32  ;;  %v362_v34 = vpop.f32.mrb[5].mxu0 }
 0x28f   :  { %v282_v35 = vpop.f32.mrb[6].mxu0 }
 0x290   :  { %379 = vtanh.f32 %v280_v33  ;;  %v363_v36 = vpop.f32.mrb[7].mxu0 }
 0x29a   :  { %v380_v37 = vpop.eup %379 }
 0x29b   :  { %287 = vst.msk [vmem:[%s484_s7] sm:$0xff] %vm286_vm3, %v380_v37 }

</bundles_post_ra>
